<compile_context>
chip_gen: v7x
topology: tpu7x:2x2x1
jax: 0.10.0
libtpu: 0.0.40
codegen_flags: <defaults>
</compile_context>

<pallas_src>
import functools

import jax
import jax.numpy as jnp
from jax.experimental import pallas as pl
from jax.experimental.pallas import tpu as pltpu


def _ctx_window_kernel(n_cls, n_ctx, bc, ctx_tile_ref, emb_ref, out_ref, sem):
    """Write the broadcast ctx tile into token positions [1, 1+n_ctx).

    ctx_tile_ref: (bc, n_ctx, D) VMEM, identical block every grid step
                  (fetched once per core by the pipeline).
    emb_ref:      (n_cls, L, D) HBM, aliased to out_ref — never read.
    out_ref:      (n_cls, L, D) HBM; prefix/suffix content is already in place
                  via the aliasing, so only the ctx window is written.
    """
    del emb_ref  # Same buffer as out_ref (input_output_aliases); unused.
    i = pl.program_id(0)
    # Clamp the (possibly ragged) last block so the DMA shape stays static.
    # Overlapped rows are rewritten with identical data -> idempotent.
    start = jnp.minimum(i * bc, n_cls - bc)
    cp = pltpu.make_async_copy(
        ctx_tile_ref,
        out_ref.at[pl.ds(start, bc), pl.ds(1, n_ctx), :],
        sem,
    )
    cp.start()
    cp.wait()


def prompt_learner_forward(embedding, ctx, block_classes=None):
    """CoOp PromptLearner forward ('end' class-token position).

    embedding: (n_cls, L, D) token embedding of the tokenized prompts
               (the buffer from which token_prefix / token_suffix are slices).
               Aliased to the output; callers should donate it for zero-copy.
    ctx:       (n_ctx, D) learned generic context vectors.
    returns:   (n_cls, L, D) prompts ==
               concat([embedding[:, :1], broadcast(ctx), embedding[:, 1+n_ctx:]], axis=1)
    """
    n_cls, L, d = embedding.shape
    n_ctx = ctx.shape[0]
    assert 1 + n_ctx <= L, "prompt length must hold SOS + ctx tokens"
    out_dtype = embedding.dtype
    itemsize = jnp.dtype(out_dtype).itemsize

    # ---- choose the class-tile size bc (python-level, trace time) ----------
    bytes_per_class = n_ctx * d * itemsize
    target_block_bytes = 2 * 1024 * 1024   # ~2 MiB per-step DMA: roofline-sized
    if block_classes is None:
        bc = max(1, int(target_block_bytes // max(1, bytes_per_class)))
        bc = min(bc, n_cls)
        # Ensure >= 2 steps so ("parallel",) can split across v7x's 2 cores.
        if n_cls >= 2:
            bc = min(bc, pl.cdiv(n_cls, 2))
        num_steps = pl.cdiv(n_cls, bc)
        # Re-balance so every step moves (almost) the same number of classes.
        bc = pl.cdiv(n_cls, num_steps)
    else:
        bc = max(1, min(int(block_classes), n_cls))
    num_steps = pl.cdiv(n_cls, bc)

    # ---- broadcast ctx across the class tile once, in the wrapper ----------
    # Tiny (bc * n_ctx * D), read once per core; keeps the kernel pure-DMA.
    ctx_tile = jnp.broadcast_to(
        ctx.astype(out_dtype)[None, :, :], (bc, n_ctx, d))

    block_bytes = bc * n_ctx * d * itemsize
    # Modest VMEM declaration: block (double buffered) + headroom, capped at
    # 32 MiB so adjacent kernels keep room even on v7x's 64 MiB per core.
    vmem_limit = int(min(32 * 1024 * 1024,
                         max(8 * 1024 * 1024, 4 * block_bytes)))
    bytes_accessed = int(block_bytes + n_cls * n_ctx * d * itemsize)

    grid_spec = pltpu.PrefetchScalarGridSpec(
        num_scalar_prefetch=0,
        grid=(num_steps,),
        in_specs=[
            # ctx tile: same block every step -> stays VMEM resident per core.
            pl.BlockSpec((bc, n_ctx, d), lambda i: (0, 0, 0)),
            # full token embedding: stays in HBM, aliased to the output.
            pl.BlockSpec(memory_space=pl.ANY),
        ],
        out_specs=pl.BlockSpec(memory_space=pl.ANY),
        scratch_shapes=[pltpu.SemaphoreType.DMA(())],
    )

    kernel = functools.partial(_ctx_window_kernel, n_cls, n_ctx, bc)

    prompts = pl.pallas_call(
        kernel,
        out_shape=jax.ShapeDtypeStruct((n_cls, L, d), out_dtype),
        grid_spec=grid_spec,
        input_output_aliases={1: 0},   # embedding buffer IS the output buffer
        compiler_params=pltpu.CompilerParams(
            dimension_semantics=("parallel",),
            vmem_limit_bytes=vmem_limit,
        ),
        cost_estimate=pl.CostEstimate(
            flops=0, transcendentals=0, bytes_accessed=bytes_accessed),
    )(ctx_tile, embedding)

    return prompts


if __name__ == "__main__":
    # Small synthetic configuration consistent with the module:
    #   n_cls classes, n_ctx = 5 context tokens, ctx_dim embedding dim,
    #   total tokenized length L (CLIP uses L=77 / ctx_dim=512; shrunk here).
    n_cls, n_ctx, ctx_dim, L = 20, 5, 128, 16
    dtype = jnp.float32

    key = jax.random.PRNGKey(0)
    k_ctx, k_emb = jax.random.split(key)

    # self.ctx: generic context vectors, nn.init.normal_(std=0.02)
    ctx = (0.02 * jax.random.normal(k_ctx, (n_ctx, ctx_dim))).astype(dtype)

    # Synthetic token embedding of the tokenized prompts: (n_cls, L, ctx_dim)
    embedding = jax.random.normal(k_emb, (n_cls, L, ctx_dim)).astype(dtype)
    token_prefix = embedding[:, :1, :]            # SOS embedding
    token_suffix = embedding[:, 1 + n_ctx:, :]    # class tokens + EOS + pad

    # Pure-JAX reference of the "end" branch (computed before donation).
    ctx_b = jnp.broadcast_to(ctx[None, :, :], (n_cls, n_ctx, ctx_dim))
    ref = jnp.concatenate([token_prefix, ctx_b, token_suffix], axis=1)
    ref = jax.block_until_ready(ref)

    # Independent copy to exercise the ragged / clamped multi-step path too.
    emb_ragged = jax.block_until_ready(jnp.copy(embedding))

    # Main path: jit with donation so the aliasing is truly zero-copy.
    fwd = jax.jit(prompt_learner_forward, donate_argnums=(0,))
    prompts = jax.block_until_ready(fwd(embedding, ctx))

    # Ragged path: 20 classes with bc=8 -> 3 steps, last step clamped/overlapping.
    prompts_ragged = jax.block_until_ready(
        prompt_learner_forward(emb_ragged, ctx, block_classes=8))

    assert prompts.shape == (n_cls, L, ctx_dim)
    assert bool(jnp.array_equal(prompts, ref))
    assert bool(jnp.array_equal(prompts_ragged, ref))
    print("KERNEL_OK")
</pallas_src>

<mosaic_0001>
module attributes {stable_mosaic.version = 11 : i64} {
  func.func @_ctx_window_kernel(%arg0: i32, %arg1: memref<10x5x128xf32, #tpu.memory_space<vmem>>, %arg2: memref<20x16x128xf32, #tpu.memory_space<any>>, %arg3: memref<20x16x128xf32, #tpu.memory_space<any>>, %arg4: memref<!tpu.dma_semaphore, #tpu.memory_space<semaphore_mem>>) attributes {dimension_semantics = [#tpu.dimension_semantics<parallel>], iteration_bounds = array<i64: 2>, scalar_prefetch = 0 : i64, scratch_operands = 1 : i64, tpu.core_type = #tpu.core_type<tc>, window_params = [{pipeline_mode = #tpu.pipeline_mode<synchronous>, transform_indices = @transform_0, window_bounds = array<i64: 10, 5, 128>}, {}, {}]} {
    %c10_i32 = arith.constant 10 : i32
    %0 = arith.muli %arg0, %c10_i32 : i32
    %c10_i32_0 = arith.constant 10 : i32
    %1 = arith.minsi %0, %c10_i32_0 : i32
    %c1_i32 = arith.constant 1 : i32
    %c0_i32 = arith.constant 0 : i32
    %2 = tpu.memref_slice %arg3[%1, %c1_i32, %c0_i32] : memref<20x16x128xf32, #tpu.memory_space<any>> -> memref<10x5x128xf32, #tpu.memory_space<any>>
    tpu.enqueue_dma source(%arg1 : memref<10x5x128xf32, #tpu.memory_space<vmem>>) target(%2 : memref<10x5x128xf32, #tpu.memory_space<any>>) target_semaphore(%arg4 : memref<!tpu.dma_semaphore, #tpu.memory_space<semaphore_mem>>)
    %c1_i32_1 = arith.constant 1 : i32
    %c0_i32_2 = arith.constant 0 : i32
    %3 = tpu.memref_slice %arg3[%1, %c1_i32_1, %c0_i32_2] : memref<20x16x128xf32, #tpu.memory_space<any>> -> memref<10x5x128xf32, #tpu.memory_space<any>>
    tpu.wait_dma2 semaphore(%arg4 : memref<!tpu.dma_semaphore, #tpu.memory_space<semaphore_mem>>) src(%arg1 : memref<10x5x128xf32, #tpu.memory_space<vmem>>) dst(%3 : memref<10x5x128xf32, #tpu.memory_space<any>>)
    return
  }
  func.func @transform_0(%arg0: i32) -> (i32, i32, i32) {
    %c0_i32 = arith.constant 0 : i32
    %c0_i32_0 = arith.constant 0 : i32
    %c0_i32_1 = arith.constant 0 : i32
    %c0_i32_2 = arith.constant 0 : i32
    return %c0_i32, %c0_i32_0, %c0_i32_1 : i32, i32, i32
  }
}

</mosaic_0001>

<bundles_post_ra>
// kernel: prompt_learner_forward.1
= control target key start
LH: loop header
LB: loop body
LE: loop exit
PB: predicated region body
PF: predicated region fallthrough
CT: control target
= control target key end

     0   :  { %s162_s9 = smov 0   ;;  %s208_s0 = inlined_call_operand.vmem [shape: f32[10,5,128], index: 0, kind: input, shape index: {}]   ;;  %s209_s1 = inlined_call_operand.hbm [shape: f32[20,16,128], index: 1, kind: input, shape index: {}, may-alias: {1,2}]   ;;  %s210_s2 = inlined_call_operand.hbm [shape: f32[20,16,128], index: 2, kind: output, shape index: {}, may-alias: {1,2}]  }
   0x1 LB: > { %s79_s10 = sadd.s32 4294967295, %s142_s9   ;;  %s56_s14 = sshll.u32 %s208_s0, 4  ;;  %s142_s9 = sphi %s162_s9, %s12_s9   ;;  %s172_s14 = int_to_ptr.vmem [resolvable:$true] %s56_s14 }
   0x2   : > { %s48_s11 = smul.u32 10, %s79_s10  ;;  %p91_p1 = scmp.ge.s32.totalorder %s142_s9, 1 }
   0x3   : > { %s103_s19 = scalar_lea.vmem %s172_s14, 800  ;;  %s109_s20 = scalar_lea.vmem %s172_s14, 1280 }
   0x4   : > { %p49_p0 = scmp.lt.s32.totalorder %s48_s11, 10  ;;  %p104_p2 = scmp.ne.s32.totalorder %s172_s14, %s103_s19 }
   0x5   : > { %p110_p5 = scmp.lt.s32.totalorder %s172_s14, %s172_s14  ;;  %p111_p6 = scmp.lt.s32.totalorder %s109_s20, %s103_s19 }
   0x6   : > { %s212_s11 = smov (!%p49_p0, %s48_s11), 10  ;;  %p105_p3 = pnand %p104_p2, %p91_p1 }
   0x7   : > { %s87_s1 = sshll.u32 %s212_s11, 8  ;;  %p112_p7 = por %p111_p6, %p110_p5 }
   0x8   : > { %s72_s17 = scalar_lea.hbm %s210_s2, %s87_s1  ;;  %p106_p4 = pneg %p105_p3 }
   0x9   : > { %s177_s18 = scalar_lea.hbm %s72_s17, 16 }
   0xa   : > { %p113_p8 = pnand %p112_p7, %p106_p4 }
   0xc   : > { %116 = shalt.err (!%p113_p8)  }
   0xd   : > { %s131_s21 = scalar_lea.hbm %s72_s17, 816  ;;  %s121_s24 = scalar_lea.hbm %s210_s2, 5120 }
   0xe   : > { %p118_p9 = scmp.ne.s32.totalorder %s177_s18, %s131_s21  ;;  %p122_p12 = scmp.lt.u32.totalorder %s177_s18, %s210_s2 }
   0xf   : > { %p123_p13 = scmp.lt.u32.totalorder %s121_s24, %s131_s21  ;;  %p125_p2 = scmp.lt.u32.totalorder %s131_s21, %s177_s18 }
  0x10   : > { %p119_p10 = pnand %p118_p9, %p91_p1 }
  0x11   : > { %p124_p0 = por %p123_p13, %p122_p12 }
  0x12   : > { %p120_p11 = pneg %p119_p10 }
  0x13   : > { %p126_p3 = por %p125_p2, %p124_p0 }
  0x15   : > { %p127_p4 = pnand %p126_p3, %p120_p11 }
  0x17   : > { %130 = shalt.err (!%p127_p4)  }
  0x18   : > { %s144_s27 = smov 128   ;;  %s145_s28 = smov 256  }
  0x19   : > { %s146_s29 = smov 5  }
  0x1a   : > { %89 = dma.vmem_to_hbm [thread:$0]  (%p91_p1), %s172_s14, 800, %s177_s18, [#allocation2], %s144_s27, %s145_s28, %s146_s29 }
  0x1b   : > { %137 = dma.done.wait (%p91_p1), [#allocation2], 800 }
  0x1c   : > { %139 = vsyncadd (%p91_p1), [#allocation2], 4294966496  ;;  %s12_s9 = sadd.s32 1, %s142_s9  }
  0x1d   : > { %p9_p5 = scmp.ge.s32.totalorder %s12_s9, 3  }
  0x1f   :  { %11 = sbr.rel (!%p9_p5) target bundleno = 1 (0x1), region = 36 }
  0x26   :  { %64 = vsyncmov [#allocation2] }
  0x29   :  { %s65_s30 = vpop.sfrf %64 }
  0x2a   :  { %p86_p6 = scmp.ne.s32.totalorder %s65_s30, 0 }
  0x2c   :  { %69 = shalt.err (%p86_p6)  }

</bundles_post_ra>
